<compile_context>
chip_gen: v7x
topology: tpu7x:2x2x1
jax: 0.10.0
libtpu: 0.0.40
codegen_flags: <defaults>
</compile_context>

<pallas_src>
import math

import jax
import jax.numpy as jnp
from jax.experimental import pallas as pl
from jax.experimental.pallas import tpu as pltpu

# Small MCAN-like config
HIDDEN_SIZE = 32
MULTI_HEAD = 4
HEAD_DIM = HIDDEN_SIZE // MULTI_HEAD
FF_SIZE = 4 * HIDDEN_SIZE            # 128 -> lane-dense FFN hidden
BATCH = 2
SEQ = 8
LN_EPS = 1e-6

# Weight-slab row layout (all column counts padded to 128 lanes):
#   rows [0,  H)          : [Wq | Wk | Wv | W_c]        (H, 4H) = (32, 128)
#   rows [H,  2H)         : W_f1                        (32, 128)
#   rows [2H, 2H+FF)      : W_f2  in cols [0, H)        (128, 32)
#   rows [2H+FF, 2H+FF+H) : Wm in cols [0,H); w_acc col H; w_cp col H+1
_W_ROWS = 2 * HIDDEN_SIZE + FF_SIZE + HIDDEN_SIZE      # 224
_ROW_W1 = 0
_ROW_WF1 = HIDDEN_SIZE
_ROW_WF2 = 2 * HIDDEN_SIZE
_ROW_WM = 2 * HIDDEN_SIZE + FF_SIZE


def _sigmoid(x):
    return 1.0 / (1.0 + jnp.exp(-x))


def _layer_norm(x, gamma, beta):
    # openvqa LayerNorm: a * (x - mean) / (std_unbiased + eps) + b  (torch.std default)
    mean = jnp.mean(x, axis=-1, keepdims=True)
    xc = x - mean
    var = jnp.sum(xc * xc, axis=-1, keepdims=True) * (1.0 / (x.shape[-1] - 1))
    inv = 1.0 / (jnp.sqrt(var) + LN_EPS)          # per-row divide only
    return gamma * (xc * inv) + beta


def sa_kernel(act_ref, w_ref, b_ref, out_ref):
    H = HIDDEN_SIZE
    MH, DH = MULTI_HEAD, HEAD_DIM
    FF = FF_SIZE
    N = BATCH * SEQ

    y = act_ref[:, 0:H]                                  # (N, H)
    mask = act_ref[:, H:H + N]                           # (N, N) additive mask (key-pad + cross-batch)

    # ---- fused q|k|v|lin_c projection: ONE lane-dense (N,32)@(32,128) matmul -----
    w1 = w_ref[_ROW_W1:_ROW_W1 + H, :]                   # (32, 128)
    b1 = b_ref[0:1, :]                                   # (1, 128)
    big = jnp.dot(y, w1, preferred_element_type=jnp.float32) + b1   # (N, 128)
    c_lin = big[:, 3 * H:4 * H]                          # lin_c(y)  (N, H)

    # ---- multi-head attention (batch folded into rows; heads batched on axis 0) ----
    qh = jnp.stack([big[:, h * DH:(h + 1) * DH] for h in range(MH)], axis=0)            # (MH,N,DH)
    kh = jnp.stack([big[:, H + h * DH:H + (h + 1) * DH] for h in range(MH)], axis=0)    # (MH,N,DH)
    vh = jnp.stack([big[:, 2 * H + h * DH:2 * H + (h + 1) * DH] for h in range(MH)], axis=0)

    s = jnp.einsum('hqd,hkd->hqk', qh, kh, preferred_element_type=jnp.float32)          # (MH,N,N)
    s = s * (1.0 / math.sqrt(DH)) + mask
    m = jnp.max(s, axis=-1, keepdims=True)
    p = jnp.exp(s - m)
    l = jnp.sum(p, axis=-1, keepdims=True)
    att = p * pl.reciprocal(l, approx=True)              # EUP slot
    ctx = jnp.einsum('hqk,hkd->hqd', att, vh, preferred_element_type=jnp.float32)       # (MH,N,DH)

    # ---- merge projection: lane-concat heads -> ONE (N,32)@(32,32) matmul ----------
    ctx_flat = jnp.concatenate([ctx[h] for h in range(MH)], axis=1)                     # (N, H)
    wm = w_ref[_ROW_WM:_ROW_WM + H, 0:H]                 # (32, 32)
    bm = b_ref[2:3, 0:H]                                 # (1, 32)
    atted = jnp.dot(ctx_flat, wm, preferred_element_type=jnp.float32) + bm              # (N, H)

    # ---- context gate -------------------------------------------------------------
    # linear_cc(lin_ac(mean_seq(y))) folded (wrapper-side) into one (H,1) column +
    # scalar; mean commutes with the linear map so pool AFTER the matvec.
    w_acc = w_ref[_ROW_WM:_ROW_WM + H, H:H + 1]          # (32, 1) = W_ac @ w_cc
    b_acc = b_ref[2:3, H:H + 1]                          # (1, 1)  = b_ac @ w_cc + b_cc
    t = jnp.dot(y, w_acc, preferred_element_type=jnp.float32)                            # (N, 1)
    cc_parts = []
    for b in range(BATCH):                               # static, BATCH=2
        mb = jnp.sum(t[b * SEQ:(b + 1) * SEQ, :], axis=0, keepdims=True) * (1.0 / SEQ)  # (1, 1)
        cc_parts.append(jnp.broadcast_to(mb, (SEQ, 1)))
    cc = jnp.concatenate(cc_parts, axis=0) + b_acc       # (N, 1)

    context_p = _sigmoid(c_lin + cc)                     # (N, H)
    w_cp = w_ref[_ROW_WM:_ROW_WM + H, H + 1:H + 2]       # (32, 1)
    b_cp = b_ref[2:3, H + 1:H + 2]                       # (1, 1)
    cpp = jnp.dot(context_p, w_cp, preferred_element_type=jnp.float32) + b_cp           # (N, 1)
    gate = _sigmoid(cpp)
    atted = atted * (gate + 1.0)                         # context_gp * atted + atted

    # ---- residual + LayerNorm 1 ----------------------------------------------------
    y1 = _layer_norm(y + atted, b_ref[4:5, 0:H], b_ref[5:6, 0:H])

    # ---- FFN: Linear(32->128) -> ReLU -> Linear(128->32) ---------------------------
    wf1 = w_ref[_ROW_WF1:_ROW_WF1 + H, :]                # (32, 128) lane-dense
    bf1 = b_ref[1:2, :]                                  # (1, 128)
    hmid = jnp.maximum(jnp.dot(y1, wf1, preferred_element_type=jnp.float32) + bf1, 0.0)
    wf2 = w_ref[_ROW_WF2:_ROW_WF2 + FF, 0:H]             # (128, 32)
    bf2 = b_ref[3:4, 0:H]                                # (1, 32)
    ff = jnp.dot(hmid, wf2, preferred_element_type=jnp.float32) + bf2

    # ---- residual + LayerNorm 2 ----------------------------------------------------
    out_ref[...] = _layer_norm(y1 + ff, b_ref[6:7, 0:H], b_ref[7:8, 0:H])


def sa_forward(y, y_mask, params):
    """y: (B, S, H) float32; y_mask: (B, 1, 1, S) int32 (nonzero = masked key)."""
    B, S, H = y.shape
    N = B * S
    FF = FF_SIZE
    p = params

    # ---- fold linear_cc ∘ lin_ac (both linear, no nonlinearity in between) ----------
    w_acc = p['w_ac'] @ p['w_cc']                                   # (H, 1)
    b_acc = (p['b_ac'] @ p['w_cc'])[0] + p['b_cc'][0]               # scalar

    # ---- one packed weight slab (224, 128) ------------------------------------------
    w_slab = jnp.zeros((_W_ROWS, 128), jnp.float32)
    w_slab = w_slab.at[_ROW_W1:_ROW_W1 + H, :].set(
        jnp.concatenate([p['wq'], p['wk'], p['wv'], p['w_c']], axis=1))
    w_slab = w_slab.at[_ROW_WF1:_ROW_WF1 + H, :].set(p['w_f1'])
    w_slab = w_slab.at[_ROW_WF2:_ROW_WF2 + FF, 0:H].set(p['w_f2'])
    w_slab = w_slab.at[_ROW_WM:_ROW_WM + H, 0:H].set(p['wm'])
    w_slab = w_slab.at[_ROW_WM:_ROW_WM + H, H:H + 1].set(w_acc)
    w_slab = w_slab.at[_ROW_WM:_ROW_WM + H, H + 1:H + 2].set(p['w_cp'])

    # ---- one packed bias/LN slab (8, 128) --------------------------------------------
    b_slab = jnp.zeros((8, 128), jnp.float32)
    b_slab = b_slab.at[0, :].set(jnp.concatenate([p['bq'], p['bk'], p['bv'], p['b_c']]))
    b_slab = b_slab.at[1, :].set(p['b_f1'])
    b_slab = b_slab.at[2, 0:H].set(p['bm'])
    b_slab = b_slab.at[2, H].set(b_acc)
    b_slab = b_slab.at[2, H + 1].set(p['b_cp'][0])
    b_slab = b_slab.at[3, 0:H].set(p['b_f2'])
    b_slab = b_slab.at[4, 0:H].set(p['ln1_a'])
    b_slab = b_slab.at[5, 0:H].set(p['ln1_b'])
    b_slab = b_slab.at[6, 0:H].set(p['ln2_a'])
    b_slab = b_slab.at[7, 0:H].set(p['ln2_b'])

    # ---- activation slab: rows = y, extra columns = additive attention mask ----------
    y_flat = y.reshape(N, H)
    batch_id = jnp.arange(N, dtype=jnp.int32) // S
    same_batch = batch_id[:, None] == batch_id[None, :]             # forbid cross-batch attention
    key_masked = (y_mask.reshape(B, S) != 0).reshape(N)
    allow = jnp.logical_and(same_batch, jnp.logical_not(key_masked)[None, :])
    mask_add = jnp.where(allow, 0.0, -1e9).astype(jnp.float32)      # (N, N)
    acts = jnp.concatenate([y_flat, mask_add], axis=1)              # (N, H + N)

    vmem = pl.BlockSpec(memory_space=pltpu.MemorySpace.VMEM)
    out_flat = pl.pallas_call(
        sa_kernel,
        out_shape=jax.ShapeDtypeStruct((N, H), jnp.float32),
        in_specs=[vmem, vmem, vmem],
        out_specs=vmem,
    )(acts, w_slab, b_slab)
    return out_flat.reshape(B, S, H)


def reference_forward(y, y_mask, params):
    """Pure-JAX replica of the PyTorch SA.forward (eval mode; dropout = identity)."""
    p = params
    B, S, H = y.shape
    MH, DH = MULTI_HEAD, HEAD_DIM

    def lin(x, w, b):
        return x @ w + b

    s = y
    # context gate
    g_k = lin(jnp.mean(s, axis=1, keepdims=True), p['w_ac'], p['b_ac'])       # (B, 1, H)
    merge_p = lin(s, p['w_c'], p['b_c']) + lin(g_k, p['w_cc'], p['b_cc'])     # (B, S, H)
    context_p = jax.nn.sigmoid(merge_p)
    context_gp = jax.nn.sigmoid(lin(context_p, p['w_cp'], p['b_cp']))         # (B, S, 1)

    # multi-head attention
    def proj(x, w, b):
        return lin(x, w, b).reshape(B, S, MH, DH).transpose(0, 2, 1, 3)
    qh, kh, vh = proj(y, p['wq'], p['bq']), proj(y, p['wk'], p['bk']), proj(y, p['wv'], p['bv'])
    scores = jnp.einsum('bhqd,bhkd->bhqk', qh, kh) / math.sqrt(DH)
    scores = jnp.where(y_mask != 0, -1e9, scores)
    att = jax.nn.softmax(scores, axis=-1)
    ctx = jnp.einsum('bhqk,bhkd->bhqd', att, vh).transpose(0, 2, 1, 3).reshape(B, S, H)
    atted = lin(ctx, p['wm'], p['bm'])
    atted = context_gp * atted + atted

    def layer_norm(x, gamma, beta):
        mean = x.mean(-1, keepdims=True)
        var = ((x - mean) ** 2).sum(-1, keepdims=True) / (H - 1)
        return gamma * (x - mean) / (jnp.sqrt(var) + LN_EPS) + beta

    y1 = layer_norm(y + atted, p['ln1_a'], p['ln1_b'])
    ff = lin(jnp.maximum(lin(y1, p['w_f1'], p['b_f1']), 0.0), p['w_f2'], p['b_f2'])
    return layer_norm(y1 + ff, p['ln2_a'], p['ln2_b'])


if __name__ == "__main__":
    key = jax.random.PRNGKey(0)
    ks = iter(jax.random.split(key, 32))

    def init_w(shape):
        return (jax.random.uniform(next(ks), shape, jnp.float32, minval=-1.0, maxval=1.0)
                / math.sqrt(shape[0]))

    def init_b(n):
        return jax.random.uniform(next(ks), (n,), jnp.float32, minval=-0.1, maxval=0.1)

    H, FF = HIDDEN_SIZE, FF_SIZE
    params = dict(
        wq=init_w((H, H)), bq=init_b(H),
        wk=init_w((H, H)), bk=init_b(H),
        wv=init_w((H, H)), bv=init_b(H),
        wm=init_w((H, H)), bm=init_b(H),
        w_c=init_w((H, H)), b_c=init_b(H),
        w_ac=init_w((H, H)), b_ac=init_b(H),
        w_cc=init_w((H, 1)), b_cc=init_b(1),
        w_cp=init_w((H, 1)), b_cp=init_b(1),
        w_f1=init_w((H, FF)), b_f1=init_b(FF),
        w_f2=init_w((FF, H)), b_f2=init_b(H),
        ln1_a=1.0 + 0.1 * jax.random.normal(next(ks), (H,), jnp.float32),
        ln1_b=0.1 * jax.random.normal(next(ks), (H,), jnp.float32),
        ln2_a=1.0 + 0.1 * jax.random.normal(next(ks), (H,), jnp.float32),
        ln2_b=0.1 * jax.random.normal(next(ks), (H,), jnp.float32),
    )

    y_in = jax.random.normal(next(ks), (BATCH, SEQ, HIDDEN_SIZE), jnp.float32)
    # mask out the last two key positions of batch 1, none in batch 0
    y_mask = jnp.zeros((BATCH, 1, 1, SEQ), jnp.int32).at[1, 0, 0, -2:].set(1)

    out = jax.jit(sa_forward)(y_in, y_mask, params)
    out = jax.block_until_ready(out)

    ref = reference_forward(y_in, y_mask, params)
    # f32 throughout; tolerance covers pl.reciprocal(approx=True) in the softmax and the
    # (exact-in-math) fold/commute of the gate pooling path.
    assert jnp.allclose(out, ref, atol=2e-3, rtol=2e-3), (
        "mismatch vs JAX reference: max abs err = "
        f"{jnp.max(jnp.abs(out - ref))}")
    print("KERNEL_OK")
</pallas_src>

<mosaic_0001>
module attributes {stable_mosaic.version = 11 : i64} {
  func.func @sa_kernel(%arg0: memref<16x48xf32, #tpu.memory_space<vmem>>, %arg1: memref<224x128xf32, #tpu.memory_space<vmem>>, %arg2: memref<8x128xf32, #tpu.memory_space<vmem>>, %arg3: memref<16x32xf32, #tpu.memory_space<vmem>>) attributes {dimension_semantics = [], scalar_prefetch = 0 : i64, scratch_operands = 0 : i64, tpu.core_type = #tpu.core_type<tc>} {
    %c0 = arith.constant 0 : index
    %c0_0 = arith.constant 0 : index
    %0 = vector.load %arg0[%c0, %c0_0] : memref<16x48xf32, #tpu.memory_space<vmem>>, vector<16x32xf32>
    %c0_1 = arith.constant 0 : index
    %c32 = arith.constant 32 : index
    %1 = vector.load %arg0[%c0_1, %c32] : memref<16x48xf32, #tpu.memory_space<vmem>>, vector<16x16xf32>
    %c0_2 = arith.constant 0 : index
    %c0_3 = arith.constant 0 : index
    %2 = vector.load %arg1[%c0_2, %c0_3] : memref<224x128xf32, #tpu.memory_space<vmem>>, vector<32x128xf32>
    %c0_4 = arith.constant 0 : index
    %c0_5 = arith.constant 0 : index
    %3 = vector.load %arg2[%c0_4, %c0_5] : memref<8x128xf32, #tpu.memory_space<vmem>>, vector<1x128xf32>
    %cst = arith.constant dense<0.000000e+00> : vector<16x128xf32>
    %4 = tpu.matmul %0, %2, %cst {dimension_numbers = #tpu.dot_dimension_numbers<[1], [0], [0], [1], [0, 0, 1, 1], [], []>} : vector<16x32xf32>, vector<32x128xf32>, vector<16x128xf32> -> vector<16x128xf32>
    %5 = vector.broadcast %3 : vector<1x128xf32> to vector<16x128xf32>
    %6 = arith.addf %4, %5 : vector<16x128xf32>
    %7 = vector.extract_strided_slice %6 {offsets = [0, 96], sizes = [16, 32], strides = [1, 1]} : vector<16x128xf32> to vector<16x32xf32>
    %8 = vector.extract_strided_slice %6 {offsets = [0, 0], sizes = [16, 8], strides = [1, 1]} : vector<16x128xf32> to vector<16x8xf32>
    %9 = vector.extract_strided_slice %6 {offsets = [0, 8], sizes = [16, 8], strides = [1, 1]} : vector<16x128xf32> to vector<16x8xf32>
    %10 = vector.extract_strided_slice %6 {offsets = [0, 16], sizes = [16, 8], strides = [1, 1]} : vector<16x128xf32> to vector<16x8xf32>
    %11 = vector.extract_strided_slice %6 {offsets = [0, 24], sizes = [16, 8], strides = [1, 1]} : vector<16x128xf32> to vector<16x8xf32>
    %12 = vector.shape_cast %8 : vector<16x8xf32> to vector<1x16x8xf32>
    %13 = vector.shape_cast %9 : vector<16x8xf32> to vector<1x16x8xf32>
    %14 = vector.shape_cast %10 : vector<16x8xf32> to vector<1x16x8xf32>
    %15 = vector.shape_cast %11 : vector<16x8xf32> to vector<1x16x8xf32>
    %16 = tpu.concatenate %12, %13, %14, %15 in 0 : vector<1x16x8xf32>, vector<1x16x8xf32>, vector<1x16x8xf32>, vector<1x16x8xf32> -> vector<4x16x8xf32>
    %17 = vector.extract_strided_slice %6 {offsets = [0, 32], sizes = [16, 8], strides = [1, 1]} : vector<16x128xf32> to vector<16x8xf32>
    %18 = vector.extract_strided_slice %6 {offsets = [0, 40], sizes = [16, 8], strides = [1, 1]} : vector<16x128xf32> to vector<16x8xf32>
    %19 = vector.extract_strided_slice %6 {offsets = [0, 48], sizes = [16, 8], strides = [1, 1]} : vector<16x128xf32> to vector<16x8xf32>
    %20 = vector.extract_strided_slice %6 {offsets = [0, 56], sizes = [16, 8], strides = [1, 1]} : vector<16x128xf32> to vector<16x8xf32>
    %21 = vector.shape_cast %17 : vector<16x8xf32> to vector<1x16x8xf32>
    %22 = vector.shape_cast %18 : vector<16x8xf32> to vector<1x16x8xf32>
    %23 = vector.shape_cast %19 : vector<16x8xf32> to vector<1x16x8xf32>
    %24 = vector.shape_cast %20 : vector<16x8xf32> to vector<1x16x8xf32>
    %25 = tpu.concatenate %21, %22, %23, %24 in 0 : vector<1x16x8xf32>, vector<1x16x8xf32>, vector<1x16x8xf32>, vector<1x16x8xf32> -> vector<4x16x8xf32>
    %26 = vector.extract_strided_slice %6 {offsets = [0, 64], sizes = [16, 8], strides = [1, 1]} : vector<16x128xf32> to vector<16x8xf32>
    %27 = vector.extract_strided_slice %6 {offsets = [0, 72], sizes = [16, 8], strides = [1, 1]} : vector<16x128xf32> to vector<16x8xf32>
    %28 = vector.extract_strided_slice %6 {offsets = [0, 80], sizes = [16, 8], strides = [1, 1]} : vector<16x128xf32> to vector<16x8xf32>
    %29 = vector.extract_strided_slice %6 {offsets = [0, 88], sizes = [16, 8], strides = [1, 1]} : vector<16x128xf32> to vector<16x8xf32>
    %30 = vector.shape_cast %26 : vector<16x8xf32> to vector<1x16x8xf32>
    %31 = vector.shape_cast %27 : vector<16x8xf32> to vector<1x16x8xf32>
    %32 = vector.shape_cast %28 : vector<16x8xf32> to vector<1x16x8xf32>
    %33 = vector.shape_cast %29 : vector<16x8xf32> to vector<1x16x8xf32>
    %34 = tpu.concatenate %30, %31, %32, %33 in 0 : vector<1x16x8xf32>, vector<1x16x8xf32>, vector<1x16x8xf32>, vector<1x16x8xf32> -> vector<4x16x8xf32>
    "tpu.trace_start"() <{level = 10 : i32, message = "hqd,hkd->hqk"}> : () -> ()
    %cst_6 = arith.constant dense<0.000000e+00> : vector<4x16x16xf32>
    %35 = tpu.matmul %16, %25, %cst_6 {dimension_numbers = #tpu.dot_dimension_numbers<[2], [2], [1], [1], [0, 0, 0, 1, 1, 1], [0], [0]>} : vector<4x16x8xf32>, vector<4x16x8xf32>, vector<4x16x16xf32> -> vector<4x16x16xf32>
    "tpu.trace_stop"() : () -> ()
    %cst_7 = arith.constant 0.353553385 : f32
    %36 = vector.broadcast %cst_7 : f32 to vector<4x16x16xf32>
    %37 = arith.mulf %35, %36 : vector<4x16x16xf32>
    %38 = vector.shape_cast %1 : vector<16x16xf32> to vector<1x16x16xf32>
    %39 = vector.broadcast %38 : vector<1x16x16xf32> to vector<4x16x16xf32>
    %40 = arith.addf %37, %39 : vector<4x16x16xf32>
    %cst_8 = arith.constant dense<0xFF800000> : vector<4x16xf32>
    %41 = vector.multi_reduction <maximumf>, %40, %cst_8 [2] : vector<4x16x16xf32> to vector<4x16xf32>
    %42 = vector.shape_cast %41 : vector<4x16xf32> to vector<4x16x1xf32>
    %43 = vector.broadcast %42 : vector<4x16x1xf32> to vector<4x16x16xf32>
    %44 = arith.subf %40, %43 : vector<4x16x16xf32>
    %45 = math.exp %44 : vector<4x16x16xf32>
    %cst_9 = arith.constant dense<0.000000e+00> : vector<4x16xf32>
    %46 = vector.multi_reduction <add>, %45, %cst_9 [2] : vector<4x16x16xf32> to vector<4x16xf32>
    %47 = vector.shape_cast %46 : vector<4x16xf32> to vector<4x16x1xf32>
    %48 = tpu.reciprocal %47 {approx = true} : vector<4x16x1xf32> -> vector<4x16x1xf32>
    %49 = vector.broadcast %48 : vector<4x16x1xf32> to vector<4x16x16xf32>
    %50 = arith.mulf %45, %49 : vector<4x16x16xf32>
    "tpu.trace_start"() <{level = 10 : i32, message = "hqk,hkd->hqd"}> : () -> ()
    %cst_10 = arith.constant dense<0.000000e+00> : vector<4x16x8xf32>
    %51 = tpu.matmul %50, %34, %cst_10 {dimension_numbers = #tpu.dot_dimension_numbers<[2], [1], [1], [2], [0, 0, 0, 1, 1, 2], [0], [0]>} : vector<4x16x16xf32>, vector<4x16x8xf32>, vector<4x16x8xf32> -> vector<4x16x8xf32>
    "tpu.trace_stop"() : () -> ()
    %52 = vector.extract_strided_slice %51 {offsets = [0, 0, 0], sizes = [1, 16, 8], strides = [1, 1, 1]} : vector<4x16x8xf32> to vector<1x16x8xf32>
    %53 = vector.shape_cast %52 : vector<1x16x8xf32> to vector<16x8xf32>
    %54 = vector.extract_strided_slice %51 {offsets = [1, 0, 0], sizes = [1, 16, 8], strides = [1, 1, 1]} : vector<4x16x8xf32> to vector<1x16x8xf32>
    %55 = vector.shape_cast %54 : vector<1x16x8xf32> to vector<16x8xf32>
    %56 = vector.extract_strided_slice %51 {offsets = [2, 0, 0], sizes = [1, 16, 8], strides = [1, 1, 1]} : vector<4x16x8xf32> to vector<1x16x8xf32>
    %57 = vector.shape_cast %56 : vector<1x16x8xf32> to vector<16x8xf32>
    %58 = vector.extract_strided_slice %51 {offsets = [3, 0, 0], sizes = [1, 16, 8], strides = [1, 1, 1]} : vector<4x16x8xf32> to vector<1x16x8xf32>
    %59 = vector.shape_cast %58 : vector<1x16x8xf32> to vector<16x8xf32>
    %60 = tpu.concatenate %53, %55, %57, %59 in 1 : vector<16x8xf32>, vector<16x8xf32>, vector<16x8xf32>, vector<16x8xf32> -> vector<16x32xf32>
    %c192 = arith.constant 192 : index
    %c0_11 = arith.constant 0 : index
    %61 = vector.load %arg1[%c192, %c0_11] : memref<224x128xf32, #tpu.memory_space<vmem>>, vector<32x32xf32>
    %c2 = arith.constant 2 : index
    %c0_12 = arith.constant 0 : index
    %62 = vector.load %arg2[%c2, %c0_12] : memref<8x128xf32, #tpu.memory_space<vmem>>, vector<1x32xf32>
    %cst_13 = arith.constant dense<0.000000e+00> : vector<16x32xf32>
    %63 = tpu.matmul %60, %61, %cst_13 {dimension_numbers = #tpu.dot_dimension_numbers<[1], [0], [0], [1], [0, 0, 1, 1], [], []>} : vector<16x32xf32>, vector<32x32xf32>, vector<16x32xf32> -> vector<16x32xf32>
    %64 = vector.broadcast %62 : vector<1x32xf32> to vector<16x32xf32>
    %65 = arith.addf %63, %64 : vector<16x32xf32>
    %c192_14 = arith.constant 192 : index
    %c32_15 = arith.constant 32 : index
    %66 = vector.load %arg1[%c192_14, %c32_15] : memref<224x128xf32, #tpu.memory_space<vmem>>, vector<32x1xf32>
    %c2_16 = arith.constant 2 : index
    %c32_17 = arith.constant 32 : index
    %67 = vector.load %arg2[%c2_16, %c32_17] : memref<8x128xf32, #tpu.memory_space<vmem>>, vector<1x1xf32>
    %cst_18 = arith.constant dense<0.000000e+00> : vector<16x1xf32>
    %68 = tpu.matmul %0, %66, %cst_18 {dimension_numbers = #tpu.dot_dimension_numbers<[1], [0], [0], [1], [0, 0, 1, 1], [], []>} : vector<16x32xf32>, vector<32x1xf32>, vector<16x1xf32> -> vector<16x1xf32>
    %69 = vector.extract_strided_slice %68 {offsets = [0, 0], sizes = [8, 1], strides = [1, 1]} : vector<16x1xf32> to vector<8x1xf32>
    %cst_19 = arith.constant dense<0.000000e+00> : vector<1xf32>
    %70 = vector.multi_reduction <add>, %69, %cst_19 [0] : vector<8x1xf32> to vector<1xf32>
    %71 = vector.shape_cast %70 : vector<1xf32> to vector<1x1xf32>
    %cst_20 = arith.constant 1.250000e-01 : f32
    %72 = vector.broadcast %cst_20 : f32 to vector<1x1xf32>
    %73 = arith.mulf %71, %72 : vector<1x1xf32>
    %74 = vector.shape_cast %73 : vector<1x1xf32> to vector<1x1xf32>
    %75 = vector.broadcast %74 : vector<1x1xf32> to vector<8x1xf32>
    %76 = vector.extract_strided_slice %68 {offsets = [8, 0], sizes = [8, 1], strides = [1, 1]} : vector<16x1xf32> to vector<8x1xf32>
    %cst_21 = arith.constant dense<0.000000e+00> : vector<1xf32>
    %77 = vector.multi_reduction <add>, %76, %cst_21 [0] : vector<8x1xf32> to vector<1xf32>
    %78 = vector.shape_cast %77 : vector<1xf32> to vector<1x1xf32>
    %cst_22 = arith.constant 1.250000e-01 : f32
    %79 = vector.broadcast %cst_22 : f32 to vector<1x1xf32>
    %80 = arith.mulf %78, %79 : vector<1x1xf32>
    %81 = vector.shape_cast %80 : vector<1x1xf32> to vector<1x1xf32>
    %82 = vector.broadcast %81 : vector<1x1xf32> to vector<8x1xf32>
    %83 = tpu.concatenate %75, %82 in 0 : vector<8x1xf32>, vector<8x1xf32> -> vector<16x1xf32>
    %84 = vector.broadcast %67 : vector<1x1xf32> to vector<16x1xf32>
    %85 = arith.addf %83, %84 : vector<16x1xf32>
    %86 = vector.broadcast %85 : vector<16x1xf32> to vector<16x32xf32>
    %87 = arith.addf %7, %86 : vector<16x32xf32>
    %cst_23 = arith.constant 0.000000e+00 : f32
    %88 = vector.broadcast %cst_23 : f32 to vector<16x32xf32>
    %89 = arith.subf %88, %87 : vector<16x32xf32>
    %90 = math.exp %89 : vector<16x32xf32>
    %cst_24 = arith.constant 1.000000e+00 : f32
    %91 = vector.broadcast %cst_24 : f32 to vector<16x32xf32>
    %92 = arith.addf %91, %90 : vector<16x32xf32>
    %cst_25 = arith.constant 1.000000e+00 : f32
    %93 = vector.broadcast %cst_25 : f32 to vector<16x32xf32>
    %94 = arith.divf %93, %92 : vector<16x32xf32>
    %c192_26 = arith.constant 192 : index
    %c33 = arith.constant 33 : index
    %95 = vector.load %arg1[%c192_26, %c33] : memref<224x128xf32, #tpu.memory_space<vmem>>, vector<32x1xf32>
    %c2_27 = arith.constant 2 : index
    %c33_28 = arith.constant 33 : index
    %96 = vector.load %arg2[%c2_27, %c33_28] : memref<8x128xf32, #tpu.memory_space<vmem>>, vector<1x1xf32>
    %cst_29 = arith.constant dense<0.000000e+00> : vector<16x1xf32>
    %97 = tpu.matmul %94, %95, %cst_29 {dimension_numbers = #tpu.dot_dimension_numbers<[1], [0], [0], [1], [0, 0, 1, 1], [], []>} : vector<16x32xf32>, vector<32x1xf32>, vector<16x1xf32> -> vector<16x1xf32>
    %98 = vector.broadcast %96 : vector<1x1xf32> to vector<16x1xf32>
    %99 = arith.addf %97, %98 : vector<16x1xf32>
    %cst_30 = arith.constant 0.000000e+00 : f32
    %100 = vector.broadcast %cst_30 : f32 to vector<16x1xf32>
    %101 = arith.subf %100, %99 : vector<16x1xf32>
    %102 = math.exp %101 : vector<16x1xf32>
    %cst_31 = arith.constant 1.000000e+00 : f32
    %103 = vector.broadcast %cst_31 : f32 to vector<16x1xf32>
    %104 = arith.addf %103, %102 : vector<16x1xf32>
    %cst_32 = arith.constant 1.000000e+00 : f32
    %105 = vector.broadcast %cst_32 : f32 to vector<16x1xf32>
    %106 = arith.divf %105, %104 : vector<16x1xf32>
    %cst_33 = arith.constant 1.000000e+00 : f32
    %107 = vector.broadcast %cst_33 : f32 to vector<16x1xf32>
    %108 = arith.addf %106, %107 : vector<16x1xf32>
    %109 = vector.broadcast %108 : vector<16x1xf32> to vector<16x32xf32>
    %110 = arith.mulf %65, %109 : vector<16x32xf32>
    %111 = arith.addf %0, %110 : vector<16x32xf32>
    %c4 = arith.constant 4 : index
    %c0_34 = arith.constant 0 : index
    %112 = vector.load %arg2[%c4, %c0_34] : memref<8x128xf32, #tpu.memory_space<vmem>>, vector<1x32xf32>
    %c5 = arith.constant 5 : index
    %c0_35 = arith.constant 0 : index
    %113 = vector.load %arg2[%c5, %c0_35] : memref<8x128xf32, #tpu.memory_space<vmem>>, vector<1x32xf32>
    %cst_36 = arith.constant dense<0.000000e+00> : vector<16xf32>
    %114 = vector.multi_reduction <add>, %111, %cst_36 [1] : vector<16x32xf32> to vector<16xf32>
    %115 = vector.shape_cast %114 : vector<16xf32> to vector<16x1xf32>
    %cst_37 = arith.constant 3.200000e+01 : f32
    %116 = vector.broadcast %cst_37 : f32 to vector<16x1xf32>
    %117 = arith.divf %115, %116 : vector<16x1xf32>
    %118 = vector.broadcast %117 : vector<16x1xf32> to vector<16x32xf32>
    %119 = arith.subf %111, %118 : vector<16x32xf32>
    %120 = arith.mulf %119, %119 : vector<16x32xf32>
    %cst_38 = arith.constant dense<0.000000e+00> : vector<16xf32>
    %121 = vector.multi_reduction <add>, %120, %cst_38 [1] : vector<16x32xf32> to vector<16xf32>
    %122 = vector.shape_cast %121 : vector<16xf32> to vector<16x1xf32>
    %cst_39 = arith.constant 0.0322580636 : f32
    %123 = vector.broadcast %cst_39 : f32 to vector<16x1xf32>
    %124 = arith.mulf %122, %123 : vector<16x1xf32>
    %125 = math.sqrt %124 : vector<16x1xf32>
    %cst_40 = arith.constant 9.99999997E-7 : f32
    %126 = vector.broadcast %cst_40 : f32 to vector<16x1xf32>
    %127 = arith.addf %125, %126 : vector<16x1xf32>
    %cst_41 = arith.constant 1.000000e+00 : f32
    %128 = vector.broadcast %cst_41 : f32 to vector<16x1xf32>
    %129 = arith.divf %128, %127 : vector<16x1xf32>
    %130 = vector.broadcast %129 : vector<16x1xf32> to vector<16x32xf32>
    %131 = arith.mulf %119, %130 : vector<16x32xf32>
    %132 = vector.broadcast %112 : vector<1x32xf32> to vector<16x32xf32>
    %133 = arith.mulf %132, %131 : vector<16x32xf32>
    %134 = vector.broadcast %113 : vector<1x32xf32> to vector<16x32xf32>
    %135 = arith.addf %133, %134 : vector<16x32xf32>
    %c32_42 = arith.constant 32 : index
    %c0_43 = arith.constant 0 : index
    %136 = vector.load %arg1[%c32_42, %c0_43] : memref<224x128xf32, #tpu.memory_space<vmem>>, vector<32x128xf32>
    %c1 = arith.constant 1 : index
    %c0_44 = arith.constant 0 : index
    %137 = vector.load %arg2[%c1, %c0_44] : memref<8x128xf32, #tpu.memory_space<vmem>>, vector<1x128xf32>
    %cst_45 = arith.constant dense<0.000000e+00> : vector<16x128xf32>
    %138 = tpu.matmul %135, %136, %cst_45 {dimension_numbers = #tpu.dot_dimension_numbers<[1], [0], [0], [1], [0, 0, 1, 1], [], []>} : vector<16x32xf32>, vector<32x128xf32>, vector<16x128xf32> -> vector<16x128xf32>
    %139 = vector.broadcast %137 : vector<1x128xf32> to vector<16x128xf32>
    %140 = arith.addf %138, %139 : vector<16x128xf32>
    %cst_46 = arith.constant 0.000000e+00 : f32
    %141 = vector.broadcast %cst_46 : f32 to vector<16x128xf32>
    %142 = arith.maximumf %140, %141 : vector<16x128xf32>
    %c64 = arith.constant 64 : index
    %c0_47 = arith.constant 0 : index
    %143 = vector.load %arg1[%c64, %c0_47] : memref<224x128xf32, #tpu.memory_space<vmem>>, vector<128x32xf32>
    %c3 = arith.constant 3 : index
    %c0_48 = arith.constant 0 : index
    %144 = vector.load %arg2[%c3, %c0_48] : memref<8x128xf32, #tpu.memory_space<vmem>>, vector<1x32xf32>
    %cst_49 = arith.constant dense<0.000000e+00> : vector<16x32xf32>
    %145 = tpu.matmul %142, %143, %cst_49 {dimension_numbers = #tpu.dot_dimension_numbers<[1], [0], [0], [1], [0, 0, 1, 1], [], []>} : vector<16x128xf32>, vector<128x32xf32>, vector<16x32xf32> -> vector<16x32xf32>
    %146 = vector.broadcast %144 : vector<1x32xf32> to vector<16x32xf32>
    %147 = arith.addf %145, %146 : vector<16x32xf32>
    %148 = arith.addf %135, %147 : vector<16x32xf32>
    %c6 = arith.constant 6 : index
    %c0_50 = arith.constant 0 : index
    %149 = vector.load %arg2[%c6, %c0_50] : memref<8x128xf32, #tpu.memory_space<vmem>>, vector<1x32xf32>
    %c7 = arith.constant 7 : index
    %c0_51 = arith.constant 0 : index
    %150 = vector.load %arg2[%c7, %c0_51] : memref<8x128xf32, #tpu.memory_space<vmem>>, vector<1x32xf32>
    %cst_52 = arith.constant dense<0.000000e+00> : vector<16xf32>
    %151 = vector.multi_reduction <add>, %148, %cst_52 [1] : vector<16x32xf32> to vector<16xf32>
    %152 = vector.shape_cast %151 : vector<16xf32> to vector<16x1xf32>
    %cst_53 = arith.constant 3.200000e+01 : f32
    %153 = vector.broadcast %cst_53 : f32 to vector<16x1xf32>
    %154 = arith.divf %152, %153 : vector<16x1xf32>
    %155 = vector.broadcast %154 : vector<16x1xf32> to vector<16x32xf32>
    %156 = arith.subf %148, %155 : vector<16x32xf32>
    %157 = arith.mulf %156, %156 : vector<16x32xf32>
    %cst_54 = arith.constant dense<0.000000e+00> : vector<16xf32>
    %158 = vector.multi_reduction <add>, %157, %cst_54 [1] : vector<16x32xf32> to vector<16xf32>
    %159 = vector.shape_cast %158 : vector<16xf32> to vector<16x1xf32>
    %cst_55 = arith.constant 0.0322580636 : f32
    %160 = vector.broadcast %cst_55 : f32 to vector<16x1xf32>
    %161 = arith.mulf %159, %160 : vector<16x1xf32>
    %162 = math.sqrt %161 : vector<16x1xf32>
    %cst_56 = arith.constant 9.99999997E-7 : f32
    %163 = vector.broadcast %cst_56 : f32 to vector<16x1xf32>
    %164 = arith.addf %162, %163 : vector<16x1xf32>
    %cst_57 = arith.constant 1.000000e+00 : f32
    %165 = vector.broadcast %cst_57 : f32 to vector<16x1xf32>
    %166 = arith.divf %165, %164 : vector<16x1xf32>
    %167 = vector.broadcast %166 : vector<16x1xf32> to vector<16x32xf32>
    %168 = arith.mulf %156, %167 : vector<16x32xf32>
    %169 = vector.broadcast %149 : vector<1x32xf32> to vector<16x32xf32>
    %170 = arith.mulf %169, %168 : vector<16x32xf32>
    %171 = vector.broadcast %150 : vector<1x32xf32> to vector<16x32xf32>
    %172 = arith.addf %170, %171 : vector<16x32xf32>
    %c0_58 = arith.constant 0 : index
    %c0_59 = arith.constant 0 : index
    %173 = vector.load %arg3[%c0_58, %c0_59] : memref<16x32xf32, #tpu.memory_space<vmem>>, vector<16x32xf32>
    tpu.vector_store %arg3[%c0_58, %c0_59], %172 {strides = array<i32>} : memref<16x32xf32, #tpu.memory_space<vmem>>, vector<16x32xf32>,
    return
  }
}

</mosaic_0001>

<bundles_post_ra>
// kernel: sa_forward.1
= control target key start
LH: loop header
LB: loop body
LE: loop exit
PB: predicated region body
PF: predicated region fallthrough
CT: control target
= control target key end

     0   :  { %vm26_vm0 = vcmask 261120   ;;  %s2564_s0 = inlined_call_operand.vmem [shape: f32[16,48], index: 0, kind: input, shape index: {}]   ;;  %s2565_s1 = inlined_call_operand.vmem [shape: f32[224,128], index: 1, kind: input, shape index: {}]   ;;  %s2566_s2 = inlined_call_operand.vmem [shape: f32[8,128], index: 2, kind: input, shape index: {}]   ;;  %s2567_s3 = inlined_call_operand.hbm [shape: f32[16,32], index: 3, kind: output, shape index: {}]  }
   0x1   :  { %v17_v0 = vld [vmem:[%s2565_s1] sm:$0xff]  ;;  %v18_v1 = vld [vmem:[%s2565_s1 + $0x8] sm:$0xff]  ;;  %v19_v2 = vld [vmem:[%s2565_s1 + $0x10] sm:$0xff] }
   0x2   :  { %v1906_v3 = vpack.c.bf16 %v18_v1, %v17_v0  ;;  %v20_v4 = vld [vmem:[%s2565_s1 + $0x18] sm:$0xff]  ;;  %v2229_v5 = vld [vmem:[%s2564_s0] sm:$0xff] }
   0x3   :  { %v1910_v6 = vpack.c.bf16 %v20_v4, %v19_v2  ;;  %1768 = vmatprep.mubr.msk.f32.mxu1 %vm26_vm0, %v2229_v5 }
   0x4   :  { %8 = vsyncpa [#allocation3], 0  ;;  %1907 = vmatprep.subr.bf16.mxu1 %v1906_v3  ;;  %v2236_v7 = vld [vmem:[%s2564_s0 + $0x8] sm:$0xff]  ;;  %v1638_v8 = vld [vmem:[%s2566_s2] ss:$0 sm:$0xff]  ;;  %vm126_vm1 = vcmask 64512  }
   0x5   :  { %1909 = vmatpush3.bf16.msra.mxu1 %v1906_v3  ;;  %s2181_s26 = smov 104   ;;  %s2182_s27 = smov 120   ;;  %vm2270_vm2 = vmpackc.low %vm126_vm1, %vm126_vm1  ;;  %vm493_vm3 = vcmask 130048   ;;  %vm1142_vm4 = vcmask 7168   ;;  %vm958_vm5 = vcmask 195584  }
   0x6   :  { %1911 = vmatprep.subr.bf16.mxu1 %v1910_v6  ;;  %s2183_s0 = smov 96   ;;  %s2184_s28 = smov 112  }
   0x7   :  { %s2185_s29 = smov 64   ;;  %s2187_s13 = smov 8  }
   0x8   :  { %s2188_s14 = smov 95   ;;  %s2189_s15 = smov 24  }
   0x9   :  { %1913 = vmatpush3.bf16.msra.mxu1 %v1910_v6  ;;  %s2190_s16 = smov 16   ;;  %s2191_s17 = smov 32  }
   0xc   :  { %1769 = vmatmul.mubr.msk.f32.vlgmr.msra.gmra.mrb[0].mxu1 %vm26_vm0, %v2236_v7 }
  0xdf   :  { %v1770_v9 = vpop.f32.mrb[0].mxu1 }
  0xe0   :  { %v99_v10 = vpop.f32.mrb[1].mxu1  ;;  %v2249_v12 = vadd.f32 %v1770_v9, %v1638_v8 }
  0xe1   :  { %v2243_v11 = vadd.f32 %v1638_v8, %v99_v10 }
  0xe3   :  { %118 = vrot.lane.b32.xlu1 %v2243_v11, %s2181_s26  ;;  %110 = vrot.lane.b32.xlu0 %v2243_v11, %s2182_s27  ;;  %v2255_v13 = vpack.i.bf16 %v2249_v12, %v2243_v11 }
  0xe4   :  { %1775 = vmatprep.mubr.msk.f32.mxu1 %vm126_vm1, %v2243_v11 }
  0xe7   :  { %120 = vrot.lane.b32.xlu1 %v2249_v12, %s2181_s26  ;;  %112 = vrot.lane.b32.xlu0 %v2249_v12, %s2182_s27 }
  0xeb   :  { %2032 = vrot.lane.b32.xlu0 %v2255_v13, %s2183_s0 }
 0x155   :  { %v119_v14 = vpop.permute.xlu1 %118  ;;  %v111_v15 = vpop.permute.xlu0 %110 }
 0x156   :  { %1796 = vmatprep.mubr.msk.f32.mxu0 %vm126_vm1, %v119_v14 }
 0x159   :  { %v121_v16 = vpop.permute.xlu1 %120  ;;  %v113_v17 = vpop.permute.xlu0 %112 }
 0x15a   :  { %v2260_v18 = vpack.i.bf16 %v121_v16, %v119_v14  ;;  %v2262_v19 = vpack.i.bf16 %v113_v17, %v111_v15 }
 0x15c   :  { %2042 = vrot.lane.b32.xlu0 %v2260_v18, %s2183_s0  ;;  %2037 = vrot.lane.b32.xlu1 %v2262_v19, %s2183_s0 }
 0x15d   :  { %v2033_v20 = vpop.permute.xlu0 %2032 }
 0x15e   :  { %v2035_v21 = vunpack.i.h.bf16 %v2033_v20  ;;  %v2034_v22 = vunpack.i.l.bf16 %v2033_v20 }
 0x160   :  { %v1914_v24 = vpack.c.bf16 %v2035_v21, %v2034_v22  ;;  %116 = vrot.lane.b32.xlu0 %v2249_v12, %s2184_s28  ;;  %114 = vrot.lane.b32.xlu1 %v2243_v11, %s2184_s28 }
 0x162   :  { %1916 = vmatprep.subr.msk.bf16.mxu1 %vm2270_vm2, %v1914_v24 }
 0x163   :  { %1919 = vmatpush3.bf16.xpose.msk.msra.mxu1 %vm2270_vm2, %v1914_v24 }
 0x164   :  { %479 = vrot.lane.b32.xlu0 %v2229_v5, %s2183_s0 }
 0x16a   :  { %1776 = vmatmul.mubr.msk.f32.vlgmr.msra.gmra.mrb[2].mxu1 %vm126_vm1, %v2249_v12 }
 0x16b   :  { %1782 = vmatprep.mubr.msk.f32.mxu1 %vm126_vm1, %v111_v15 }
 0x1ce   :  { %v2038_v25 = vpop.permute.xlu1 %2037  ;;  %v2043_v26 = vpop.permute.xlu0 %2042 }
 0x1cf   :  { %v2040_v27 = vunpack.i.h.bf16 %v2038_v25  ;;  %v2039_v28 = vunpack.i.l.bf16 %v2038_v25  ;;  %v2045_v29 = vunpack.i.h.bf16 %v2043_v26  ;;  %v2044_v30 = vunpack.i.l.bf16 %v2043_v26 }
 0x1d1   :  { %v1920_v31 = vpack.c.bf16 %v2040_v27, %v2039_v28  ;;  %v1932_v32 = vpack.c.bf16 %v2045_v29, %v2044_v30 }
 0x1d2   :  { %v115_v33 = vpop.permute.xlu1 %114  ;;  %v117_v34 = vpop.permute.xlu0 %116 }
 0x1d3   :  { %v2285_v35 = vpack.i.bf16 %v117_v34, %v115_v33  ;;  %1922 = vmatprep.subr.msk.bf16.mxu1 %vm2270_vm2, %v1920_v31  ;;  %1934 = vmatprep.subr.msk.bf16.mxu0 %vm2270_vm2, %v1932_v32 }
 0x1d4   :  { %1925 = vmatpush3.bf16.xpose.msk.msra.mxu1 %vm2270_vm2, %v1920_v31  ;;  %1937 = vmatpush3.bf16.xpose.msk.msra.mxu0 %vm2270_vm2, %v1932_v32 }
 0x1d5   :  { %2047 = vrot.lane.b32.xlu1 %v2285_v35, %s2183_s0 }
 0x1d6   :  { %v480_v38 = vpop.permute.xlu0 %479 }
 0x1d9   :  { %481 = vrot.lane.b32.xlu1 %v2236_v7, %s2183_s0 }
 0x1db   :  { %1783 = vmatmul.mubr.msk.f32.vlgmr.msra.gmra.mrb[4].mxu1 %vm126_vm1, %v113_v17  ;;  %1797 = vmatmul.mubr.msk.f32.vlgmr.msra.gmra.mrb[0].mxu0 %vm126_vm1, %v121_v16 }
 0x1dc   :  { %1789 = vmatprep.mubr.msk.f32.mxu1 %vm126_vm1, %v115_v33 }
 0x23d   :  { %v1777_v36 = vpop.f32.mrb[2].mxu1 }
 0x23e   :  { %v201_v37 = vpop.f32.mrb[3].mxu1  ;;  %v472_v45 = vmul.f32 0.35355338, %v1777_v36 }
 0x23f   :  { %v471_v39 = vmul.f32 0.35355338, %v201_v37 }
 0x241   :  { %v485_v40 = vadd.f32 %v480_v38, %v471_v39 }
 0x243   :  { %v494_v41 = vsel %vm493_vm3, %v485_v40, -inf }
 0x244   :  { %495 = vmax.xlane.f32.xlu0 %v494_v41 }
 0x247   :  { %v2048_v42 = vpop.permute.xlu1 %2047 }
 0x248   :  { %v2050_v43 = vunpack.i.h.bf16 %v2048_v42  ;;  %v2049_v44 = vunpack.i.l.bf16 %v2048_v42 }
 0x24a   :  { %v1926_v46 = vpack.c.bf16 %v2050_v43, %v2049_v44 }
 0x24b   :  { %v482_v47 = vpop.permute.xlu1 %481 }
 0x24c   :  { %1928 = vmatprep.subr.msk.bf16.mxu1 %vm2270_vm2, %v1926_v46  ;;  %v486_v48 = vadd.f32 %v482_v47, %v472_v45 }
 0x24d   :  { %1931 = vmatpush3.bf16.xpose.msk.msra.mxu1 %vm2270_vm2, %v1926_v46 }
 0x24e   :  { %v497_v49 = vsel %vm493_vm3, %v486_v48, -inf }
 0x24f   :  { %498 = vmax.xlane.f32.xlu1 %v497_v49 }
 0x254   :  { %1790 = vmatmul.mubr.msk.f32.vlgmr.msra.gmra.mrb[6].mxu1 %vm126_vm1, %v117_v34 }
 0x2ae   :  { %v1784_v50 = vpop.f32.mrb[4].mxu1  ;;  %v1798_v51 = vpop.f32.mrb[0].mxu0 }
 0x2af   :  { %v288_v52 = vpop.f32.mrb[5].mxu1  ;;  %v462_v53 = vpop.f32.mrb[1].mxu0  ;;  %v474_v54 = vmul.f32 0.35355338, %v1784_v50  ;;  %v478_v59 = vmul.f32 0.35355338, %v1798_v51 }
 0x2b0   :  { %v473_v55 = vmul.f32 0.35355338, %v288_v52  ;;  %v477_v56 = vmul.f32 0.35355338, %v462_v53  ;;  %v2354_v53 = vld [vmem:[%s2565_s1 + $0xd0] sm:$0xff] }
 0x2b1   :  { %v488_v62 = vadd.f32 %v482_v47, %v474_v54  ;;  %v492_v0 = vadd.f32 %v482_v47, %v478_v59  ;;  %v2359_v54 = vld [vmem:[%s2565_s1 + $0xd8] sm:$0xff] }
 0x2b2   :  { %v491_v57 = vadd.f32 %v480_v38, %v477_v56  ;;  %v487_v58 = vadd.f32 %v480_v38, %v473_v55  ;;  %v2363_v55 = vpack.i.bf16 %v2359_v54, %v2354_v53  ;;  %v2370_v56 = vld [vmem:[%s2565_s1 + $0xc0] sm:$0xff] }
 0x2b3   :  { %v503_v63 = vsel %vm493_vm3, %v488_v62, -inf  ;;  %v515_v1 = vsel %vm493_vm3, %v492_v0, -inf }
 0x2b4   :  { %v512_v60 = vsel %vm493_vm3, %v491_v57, -inf  ;;  %v500_v61 = vsel %vm493_vm3, %v487_v58, -inf }
 0x2b5   :  { %513 = vmax.xlane.f32.xlu1 %v512_v60  ;;  %501 = vmax.xlane.f32.xlu0 %v500_v61 }
 0x2b9   :  { %504 = vmax.xlane.f32.xlu0 %v503_v63 }
 0x2bd   :  { %516 = vmax.xlane.f32.xlu0 %v515_v1 }
 0x2c6   :  { %2052 = vrot.lane.b32.xlu1 %v2255_v13, %s2185_s29 }
 0x2ca   :  { %2062 = vrot.lane.b32.xlu1 %v2260_v18, %s2185_s29 }
 0x2d1   :  { %v496_v3 = vpop.xlane.xlu0 %495 }
 0x2d2   :  { %v518_v6 = vsub.f32 %v485_v40, %v496_v3 }
 0x2d3   :  { %2057 = vrot.lane.b32.xlu0 %v2262_v19, %s2185_s29 }
 0x2d4   :  { %v526_v9 = vmul.f32 1.442695, %v518_v6 }
 0x2dc   :  { %v499_v2 = vpop.xlane.xlu1 %498 }
 0x2dd   :  { %v519_v4 = vsub.f32 %v486_v48, %v499_v2 }
 0x2df   :  { %v528_v8 = vmul.f32 1.442695, %v519_v4 }
 0x2e1   :  { %2093 = vpow2.f32 %v528_v8 }
 0x2e2   :  { %2095 = vpow2.f32 %v526_v9 }
 0x2eb   :  { %v2325_v19 = vpop.eup %2093 }
 0x2ec   :  { %v2329_v21 = vpop.eup %2095  ;;  %v545_v22 = vsel %vm493_vm3, %v2325_v19, 0.0 }
 0x2ed   :  { %v542_v23 = vsel %vm493_vm3, %v2329_v21, 0.0 }
 0x327   :  { %v1791_v10 = vpop.f32.mrb[6].mxu1 }
 0x328   :  { %v476_v14 = vmul.f32 0.35355338, %v1791_v10  ;;  %v375_v15 = vpop.f32.mrb[7].mxu1 }
 0x329   :  { %v475_v16 = vmul.f32 0.35355338, %v375_v15 }
 0x32a   :  { %v2319_v17 = vadd.f32 %v482_v47, %v476_v14 }
 0x32b   :  { %v2321_v13 = vadd.f32 %v480_v38, %v475_v16 }
 0x32c   :  { %v509_v18 = vsel %vm493_vm3, %v2319_v17, -inf }
 0x32d   :  { %510 = vmax.xlane.f32.xlu0 %v509_v18  ;;  %v506_v20 = vsel %vm493_vm3, %v2321_v13, -inf }
 0x32e   :  { %507 = vmax.xlane.f32.xlu1 %v506_v20 }
 0x331   :  { %546 = vadd.xlane.f32.xlu0 %v545_v22 }
 0x332   :  { %543 = vadd.xlane.f32.xlu1 %v542_v23 }
 0x342   :  { %v514_v24 = vpop.xlane.xlu1 %513  ;;  %v502_v25 = vpop.xlane.xlu0 %501 }
 0x343   :  { %v524_v26 = vsub.f32 %v491_v57, %v514_v24  ;;  %v520_v27 = vsub.f32 %v487_v58, %v502_v25  ;;  %v2375_v57 = vld [vmem:[%s2565_s1 + $0xc8] sm:$0xff] }
 0x344   :  { %v2379_v58 = vpack.i.bf16 %v2375_v57, %v2370_v56 }
 0x345   :  { %v530_v28 = vmul.f32 1.442695, %v520_v27  ;;  %v538_v29 = vmul.f32 1.442695, %v524_v26 }
 0x346   :  { %v2053_v30 = vpop.permute.xlu1 %2052  ;;  %v505_v31 = vpop.xlane.xlu0 %504 }
 0x347   :  { %v2055_v32 = vunpack.i.h.bf16 %v2053_v30  ;;  %v2054_v33 = vunpack.i.l.bf16 %v2053_v30  ;;  %v521_v34 = vsub.f32 %v488_v62, %v505_v31  ;;  %2097 = vpow2.f32 %v530_v28 }
 0x348   :  { %2099 = vpow2.f32 %v538_v29 }
 0x349   :  { %v1938_v36 = vpack.c.bf16 %v2055_v32, %v2054_v33  ;;  %v532_v37 = vmul.f32 1.442695, %v521_v34 }
 0x34a   :  { %v517_v38 = vpop.xlane.xlu0 %516  ;;  %v2063_v59 = vpop.permute.xlu1 %2062 }
 0x34b   :  { %2101 = vpow2.f32 %v532_v37  ;;  %v525_v39 = vsub.f32 %v492_v0, %v517_v38  ;;  %1939 = vmatprep.subr.bf16.mxu1 %v1938_v36  ;;  %v2065_v15 = vunpack.i.h.bf16 %v2063_v59  ;;  %v2064_v16 = vunpack.i.l.bf16 %v2063_v59 }
 0x34c   :  { %1941 = vmatpush3.bf16.msra.mxu1 %v1938_v36 }
 0x34d   :  { %v540_v40 = vmul.f32 1.442695, %v525_v39  ;;  %v1950_v18 = vpack.c.bf16 %v2065_v15, %v2064_v16 }
 0x34e   :  { %v2058_v41 = vpop.permute.xlu0 %2057 }
 0x34f   :  { %2103 = vpow2.f32 %v540_v40  ;;  %v2060_v42 = vunpack.i.h.bf16 %v2058_v41  ;;  %v2059_v43 = vunpack.i.l.bf16 %v2058_v41 }
 0x351   :  { %v1942_v44 = vpack.c.bf16 %v2060_v42, %v2059_v43  ;;  %v2335_v45 = vpop.eup %2097 }
 0x352   :  { %v548_v46 = vsel %vm493_vm3, %v2335_v45, 0.0  ;;  %v2339_v47 = vpop.eup %2099 }
 0x353   :  { %1943 = vmatprep.subr.bf16.mxu1 %v1942_v44  ;;  %549 = vadd.xlane.f32.xlu1 %v548_v46  ;;  %v560_v50 = vsel %vm493_vm3, %v2339_v47, 0.0 }
 0x355   :  { %v2341_v48 = vpop.eup %2101 }
 0x356   :  { %v551_v49 = vsel %vm493_vm3, %v2341_v48, 0.0 }
 0x357   :  { %552 = vadd.xlane.f32.xlu0 %v551_v49  ;;  %561 = vadd.xlane.f32.xlu1 %v560_v50 }
 0x359   :  { %v2347_v51 = vpop.eup %2103 }
 0x35a   :  { %v563_v52 = vsel %vm493_vm3, %v2347_v51, 0.0 }
 0x35b   :  { %564 = vadd.xlane.f32.xlu0 %v563_v52 }
 0x368   :  { %2072 = vrot.lane.b32.xlu1 %v2363_v55, %s2183_s0 }
 0x371   :  { %2067 = vrot.lane.b32.xlu0 %v2379_v58, %s2183_s0 }
 0x3ba   :  { %v511_v60 = vpop.xlane.xlu0 %510 }
 0x3bb   :  { %v523_v61 = vsub.f32 %v2319_v17, %v511_v60  ;;  %v508_v62 = vpop.xlane.xlu1 %507 }
 0x3bc   :  { %v522_v63 = vsub.f32 %v2321_v13, %v508_v62 }
 0x3bd   :  { %v536_v0 = vmul.f32 1.442695, %v523_v61 }
 0x3be   :  { %v534_v1 = vmul.f32 1.442695, %v522_v63  ;;  %v547_v2 = vpop.xlane.xlu0 %546 }
 0x3bf   :  { %2105 = vpow2.f32 %v536_v0  ;;  %v544_v3 = vpop.xlane.xlu1 %543 }
 0x3c0   :  { %2107 = vpow2.f32 %v534_v1 }
 0x3c1   :  { %2109 = vrcp.f32 %v547_v2 }
 0x3c2   :  { %2111 = vrcp.f32 %v544_v3 }
 0x3c9   :  { %v2385_v4 = vpop.eup %2105 }
 0x3ca   :  { %v2387_v6 = vpop.eup %2107  ;;  %v557_v8 = vsel %vm493_vm3, %v2385_v4, 0.0 }
 0x3cb   :  { %v2110_v9 = vpop.eup %2109  ;;  %558 = vadd.xlane.f32.xlu0 %v557_v8  ;;  %v554_v10 = vsel %vm493_vm3, %v2387_v6, 0.0 }
 0x3cc   :  { %v2112_v14 = vpop.eup %2111  ;;  %555 = vadd.xlane.f32.xlu1 %v554_v10  ;;  %v575_v13 = vmul.f32 %v2110_v9, %v2325_v19  ;;  %v2402_v19 = vld [vmem:[%s2566_s2 + $0x2] ss:$0 sm:$0xff] }
 0x3cd   :  { %v574_v17 = vmul.f32 %v2112_v14, %v2329_v21 }
 0x3cf   :  { %1803 = vmatprep.mubr.msk.f32.mxu1 %vm493_vm3, %v574_v17 }
 0x3d0   :  { %1804 = vmatmul.mubr.msk.f32.vlgmr.msra.gmra.mrb[8].mxu1 %vm493_vm3, %v575_v13 }
 0x3d1   :  { %1945 = vmatpush3.bf16.msra.mxu1 %v1942_v44 }
 0x3d2   :  { %1951 = vmatprep.subr.bf16.mxu1 %v1950_v18 }
 0x3dd   :  { %1160 = vrot.lane.b32.xlu1 %v2402_v19, %s2183_s0 }
 0x3e0   :  { %v550_v20 = vpop.xlane.xlu1 %549 }
 0x3e1   :  { %2077 = vrot.lane.b32.xlu0 %v2285_v35, %s2185_s29  ;;  %2113 = vrcp.f32 %v550_v20 }
 0x3e4   :  { %v553_v22 = vpop.xlane.xlu0 %552  ;;  %v562_v23 = vpop.xlane.xlu1 %561 }
 0x3e5   :  { %2115 = vrcp.f32 %v553_v22 }
 0x3e6   :  { %2117 = vrcp.f32 %v562_v23 }
 0x3e8   :  { %v565_v24 = vpop.xlane.xlu0 %564  ;;  %v2073_v28 = vpop.permute.xlu1 %2072 }
 0x3e9   :  { %2119 = vrcp.f32 %v565_v24  ;;  %v2075_v33 = vunpack.i.h.bf16 %v2073_v28  ;;  %v2074_v34 = vunpack.i.l.bf16 %v2073_v28 }
 0x3eb   :  { %v2114_v21 = vpop.eup %2113  ;;  %v1966_v39 = vpack.c.bf16 %v2075_v33, %v2074_v34 }
 0x3ec   :  { %v2068_v25 = vpop.permute.xlu0 %2067  ;;  %v576_v26 = vmul.f32 %v2114_v21, %v2335_v45 }
 0x3ed   :  { %v2070_v35 = vunpack.i.h.bf16 %v2068_v25  ;;  %v2069_v27 = vunpack.i.l.bf16 %v2068_v25  ;;  %v1954_v25 = vpack.c.bf16 %v2375_v57, %v2370_v56 }
 0x3ee   :  { %1810 = vmatprep.mubr.msk.f32.mxu1 %vm493_vm3, %v576_v26  ;;  %v1958_v26 = vpack.c.bf16 %v2359_v54, %v2354_v53 }
 0x3ef   :  { %v2116_v29 = vpop.eup %2115  ;;  %v1962_v32 = vpack.c.bf16 %v2070_v35, %v2069_v27 }
 0x3f0   :  { %v2118_v30 = vpop.eup %2117  ;;  %v577_v31 = vmul.f32 %v2116_v29, %v2341_v48 }
 0x3f1   :  { %v580_v36 = vmul.f32 %v2118_v30, %v2339_v47  ;;  %v2186_v47 = vmov 0  }
 0x3f2   :  { %1811 = vmatmul.mubr.msk.f32.vlgmr.msra.gmra.mrb[10].mxu1 %vm493_vm3, %v577_v31  ;;  %2082 = vset.pattern.permute.xlu0 %v2186_v47 }
 0x3f3   :  { %v2120_v37 = vpop.eup %2119  ;;  %1953 = vmatpush3.bf16.msra.mxu1 %v1950_v18  ;;  %1824 = vmatprep.mubr.msk.f32.mxu1 %vm493_vm3, %v580_v36 }
 0x3f4   :  { %v581_v38 = vmul.f32 %v2120_v37, %v2347_v51  ;;  %1963 = vmatprep.subr.bf16.mxu1 %v1962_v32  ;;  %2081 = vset.pattern.permute.xlu1 %v2186_v47 }
 0x3f6   :  { %1825 = vmatmul.mubr.msk.f32.vlgmr.msra.gmra.mrb[12].mxu1 %vm493_vm3, %v581_v38 }
 0x3f7   :  { %1965 = vmatpush3.bf16.msra.mxu1 %v1962_v32  ;;  %1846 = vmatprep.mubr.msk.f32.mxu1 %vm26_vm0, %v2229_v5 }
 0x3f8   :  { %1967 = vmatprep.subr.bf16.mxu1 %v1966_v39 }
 0x3fb   :  { %1969 = vmatpush3.bf16.msra.mxu1 %v1966_v39 }
 0x3fe   :  { %1847 = vmatmul.mubr.msk.f32.vlgmr.msra.gmra.mrb[14].mxu1 %vm26_vm0, %v2236_v7 }
 0x458   :  { %v559_v40 = vpop.xlane.xlu0 %558 }
 0x459   :  { %2121 = vrcp.f32 %v559_v40  ;;  %v556_v41 = vpop.xlane.xlu1 %555 }
 0x45a   :  { %2123 = vrcp.f32 %v556_v41 }
 0x45c   :  { %v2078_v42 = vpop.permute.xlu0 %2077 }
 0x45d   :  { %v2080_v43 = vunpack.i.h.bf16 %v2078_v42  ;;  %v2079_v44 = vunpack.i.l.bf16 %v2078_v42  ;;  %v1161_v18 = vpop.permute.xlu1 %1160 }
 0x45f   :  { %v1946_v45 = vpack.c.bf16 %v2080_v43, %v2079_v44 }
 0x461   :  { %1947 = vmatprep.subr.bf16.mxu0 %v1946_v45 }
 0x462   :  { %1949 = vmatpush3.bf16.msra.mxu0 %v1946_v45 }
 0x463   :  { %v2122_v46 = vpop.eup %2121  ;;  %1955 = vmatprep.subr.bf16.mxu0 %v1954_v25 }
 0x464   :  { %v2124_v48 = vpop.eup %2123  ;;  %v579_v50 = vmul.f32 %v2122_v46, %v2385_v4 }
 0x465   :  { %v578_v49 = vmul.f32 %v2124_v48, %v2387_v6 }
 0x467   :  { %1817 = vmatprep.mubr.msk.f32.mxu0 %vm493_vm3, %v578_v49 }
 0x468   :  { %1818 = vmatmul.mubr.msk.f32.vlgmr.msra.gmra.mrb[2].mxu0 %vm493_vm3, %v579_v50 }
 0x469   :  { %1957 = vmatpush3.bf16.msra.mxu0 %v1954_v25 }
 0x46a   :  { %1959 = vmatprep.subr.bf16.mxu0 %v1958_v26 }
 0x46d   :  { %1961 = vmatpush3.bf16.msra.mxu0 %v1958_v26 }
 0x4a3   :  { %v2422_v51 = vpop.f32.mrb[8].mxu1 }
 0x4a4   :  { %v660_v52 = vpop.f32.mrb[9].mxu1 }
 0x4c5   :  { %v1812_v59 = vpop.f32.mrb[10].mxu1 }
 0x4c6   :  { %v747_v60 = vpop.f32.mrb[11].mxu1 }
 0x4c9   :  { %v1826_v61 = vpop.f32.mrb[12].mxu1 }
 0x4ca   :  { %v921_v62 = vpop.f32.mrb[13].mxu1 }
 0x4d1   :  { %v1848_v63 = vpop.f32.mrb[14].mxu1 }
 0x4d2   :  { %v1151_v0 = vsel %vm1142_vm4, %v1848_v63, 0.0  ;;  %v1133_v1 = vpop.f32.mrb[15].mxu1 }
 0x4d3   :  { %v1152_v2 = vrot.slane %v1151_v0, 4  ;;  %v1143_v3 = vsel %vm1142_vm4, %v1133_v1, 0.0 }
 0x4d4   :  { %v1144_v6 = vrot.slane %v1143_v3, 4 }
 0x4d5   :  { %v1153_v8 = vadd.f32 %v1152_v2, %v1151_v0 }
 0x4d6   :  { %v1145_v4 = vadd.f32 %v1144_v6, %v1143_v3 }
 0x4d7   :  { %v1154_v9 = vrot.slane %v1153_v8, 2 }
 0x4d8   :  { %v1146_v10 = vrot.slane %v1145_v4, 2 }
 0x4d9   :  { %v1155_v14 = vadd.f32 %v1154_v9, %v1153_v8 }
 0x4da   :  { %v1147_v15 = vadd.f32 %v1146_v10, %v1145_v4 }
 0x4db   :  { %v1156_v16 = vrot.slane %v1155_v14, 1 }
 0x4dc   :  { %v1148_v17 = vrot.slane %v1147_v15, 1 }
 0x4dd   :  { %v1157_v13 = vadd.f32 %v1156_v16, %v1155_v14 }
 0x4de   :  { %v1149_v20 = vadd.f32 %v1148_v17, %v1147_v15 }
 0x4df   :  { %v1158_v22 = vmul.f32 0.125, %v1157_v13 }
 0x4e0   :  { %v1150_v23 = vmul.f32 0.125, %v1149_v20 }
 0x4e1   :  { %v1164_v24 = vadd.f32 %v1161_v18, %v1158_v22 }
 0x4e2   :  { %v1163_v21 = vadd.f32 %v1161_v18, %v1150_v23 }
 0x4e3   :  { %1172 = vperm.xlu0 %2082, %v1164_v24  }
 0x4e4   :  { %1167 = vperm.xlu1 %2081, %v1163_v21  }
 0x4e8   :  { %932 = vrot.lane.b32.xlu1 %v747_v60, %s2187_s13 }
 0x4ec   :  { %934 = vrot.lane.b32.xlu1 %v1812_v59, %s2187_s13 }
 0x4f0   :  { %2084 = vrot.lane.b32.xlu1 %v2379_v58, %s2188_s14 }
 0x4f4   :  { %948 = vrot.lane.b32.xlu1 %v921_v62, %s2189_s15 }
 0x4f8   :  { %2089 = vrot.lane.b32.xlu1 %v2363_v55, %s2188_s14 }
 0x53b   :  { %v1819_v35 = vpop.f32.mrb[2].mxu0 }
 0x53c   :  { %v834_v27 = vpop.f32.mrb[3].mxu0 }
 0x53d   :  { %940 = vrot.lane.b32.xlu0 %v834_v27, %s2190_s16 }
 0x541   :  { %942 = vrot.lane.b32.xlu0 %v1819_v35, %s2190_s16 }
 0x545   :  { %950 = vrot.lane.b32.xlu0 %v1826_v61, %s2189_s15  ;;  %s2192_s15 = smov [#allocation2]  }
 0x546   :  { %s1627_s16 = sshll.u32 %s2192_s15, 4  ;;  %s1628_s16 = int_to_ptr.vmem [resolvable:$true] %s1627_s16 }
 0x547   :  { %p2162_p1 = scmp.lt.s32.totalorder %s1628_s16, %s1628_s16 }
 0x562   :  { %v1173_v58 = vpop.permute.xlu0 %1172 }
 0x563   :  { %v1176_v28 = vadd.f32 %v1173_v58, %v2249_v12  ;;  %v1168_v55 = vpop.permute.xlu1 %1167 }
 0x564   :  { %v1175_v29 = vadd.f32 %v1168_v55, %v2243_v11 }
 0x565   :  { %v1178_v56 = vsub.f32 0.0, %v1176_v28 }
 0x566   :  { %v1177_v57 = vsub.f32 0.0, %v1175_v29 }
 0x567   :  { %v1181_v30 = vmul.f32 1.442695, %v1178_v56  ;;  %v933_v31 = vpop.permute.xlu1 %932 }
 0x568   :  { %v1179_v32 = vmul.f32 1.442695, %v1177_v57  ;;  %v954_v53 = vsel %vm126_vm1, %v660_v52, %v933_v31 }
 0x569   :  { %2125 = vpow2.f32 %v1181_v30 }
 0x56a   :  { %2127 = vpow2.f32 %v1179_v32 }
 0x56b   :  { %v935_v54 = vpop.permute.xlu1 %934 }
 0x56c   :  { %v955_v33 = vsel %vm126_vm1, %v2422_v51, %v935_v54 }
 0x56f   :  { %v2085_v34 = vpop.permute.xlu1 %2084 }
 0x570   :  { %v2087_v36 = vunpack.i.h.bf16 %v2085_v34  ;;  %v2086_v37 = vunpack.i.l.bf16 %v2085_v34  ;;  %v1375_v34 = vld [vmem:[%s2565_s1 + $0x28] sm:$0xff] }
 0x572   :  { %v1970_v12 = vpack.c.bf16 %v2087_v36, %v2086_v37  ;;  %v1376_v36 = vld [vmem:[%s2565_s1 + $0x30] sm:$0xff] }
 0x573   :  { %v2126_v38 = vpop.eup %2125  ;;  %v949_v43 = vpop.permute.xlu1 %948 }
 0x574   :  { %v2128_v39 = vpop.eup %2127  ;;  %v1184_v11 = vadd.f32 1.0, %v2126_v38  ;;  %1971 = vmatprep.subr.bf16.mxu0 %v1970_v12 }
 0x575   :  { %v1183_v40 = vadd.f32 1.0, %v2128_v39  ;;  %v1466_v39 = vld [vmem:[%s2565_s1 + $0x40] sm:$0xff] }
 0x576   :  { %2129 = vrcp.f32 %v1184_v11  ;;  %v1467_v11 = vld [vmem:[%s2565_s1 + $0x48] sm:$0xff] }
 0x577   :  { %2131 = vrcp.f32 %v1183_v40  ;;  %v2090_v46 = vpop.permute.xlu1 %2089  ;;  %v1468_v40 = vld [vmem:[%s2565_s1 + $0x50] sm:$0xff] }
 0x578   :  { %v2092_v49 = vunpack.i.h.bf16 %v2090_v46  ;;  %v2091_v50 = vunpack.i.l.bf16 %v2090_v46 }
 0x57a   :  { %v1974_v59 = vpack.c.bf16 %v2092_v49, %v2091_v50  ;;  %v1474_v50 = vld [vmem:[%s2565_s1 + $0x80] sm:$0xff] }
 0x580   :  { %v2130_v41 = vpop.eup %2129 }
 0x581   :  { %v2132_v42 = vpop.eup %2131  ;;  %1193 = vrot.lane.b32.xlu1 %v2130_v41, %s2191_s17  ;;  %v1986_v41 = vpack.c.bf16 %v1467_v11, %v1466_v39 }
 0x582   :  { %1191 = vrot.lane.b32.xlu0 %v2132_v42, %s2191_s17  ;;  %v1469_v42 = vld [vmem:[%s2565_s1 + $0x58] sm:$0xff]  ;;  %s2157_s17 = scalar_lea.vmem %s1628_s16, 256 }
 0x583   :  { %p2158_p0 = scmp.ne.s32.totalorder %s1628_s16, %s2157_s17  ;;  %p2163_p2 = scmp.lt.s32.totalorder %s2157_s17, %s2157_s17 }
 0x585   :  { %p2164_p3 = por %p2163_p2, %p2162_p1 }
 0x586   :  { %1207 = vrot.lane.b32.xlu0 %v2402_v19, %s2188_s14 }
 0x587   :  { %p2165_p4 = pnand %p2164_p3, %p2158_p0 }
 0x5af   :  { %v941_v44 = vpop.permute.xlu0 %940 }
 0x5b0   :  { %v956_v45 = vsel %vm493_vm3, %v954_v53, %v941_v44  ;;  %v1470_v44 = vld [vmem:[%s2565_s1 + $0x60] sm:$0xff] }
 0x5b1   :  { %v959_v47 = vsel %vm958_vm5, %v956_v45, %v949_v43  ;;  %v1990_v43 = vpack.c.bf16 %v1469_v42, %v1468_v40  ;;  %v1471_v45 = vld [vmem:[%s2565_s1 + $0x68] sm:$0xff] }
 0x5b2   :  { %1835 = vmatprep.mubr.msk.f32.mxu0 %vm26_vm0, %v959_v47  ;;  %v1994_v46 = vpack.c.bf16 %v1471_v45, %v1470_v44  ;;  %v1472_v47 = vld [vmem:[%s2565_s1 + $0x70] sm:$0xff] }
 0x5b3   :  { %v943_v48 = vpop.permute.xlu0 %942 }
 0x5b4   :  { %v957_v51 = vsel %vm493_vm3, %v955_v33, %v943_v48  ;;  %v1374_v33 = vld [vmem:[%s2565_s1 + $0x20] sm:$0xff]  ;;  %v1473_v48 = vld [vmem:[%s2565_s1 + $0x78] sm:$0xff] }
 0x5b5   :  { %v1978_v37 = vpack.c.bf16 %v1375_v34, %v1374_v33  ;;  %v1998_v49 = vpack.c.bf16 %v1473_v48, %v1472_v47 }
 0x5b7   :  { %v951_v52 = vpop.permute.xlu0 %950  ;;  %1979 = vmatprep.subr.bf16.mxu1 %v1978_v37 }
 0x5b8   :  { %v960_v60 = vsel %vm958_vm5, %v957_v51, %v951_v52  ;;  %1981 = vmatpush3.bf16.msra.mxu1 %v1978_v37  ;;  %v1475_v51 = vld [vmem:[%s2565_s1 + $0x88] sm:$0xff] }
 0x5b9   :  { %1836 = vmatmul.mubr.msk.f32.vlgmr.msra.gmra.mrb[4].mxu0 %vm26_vm0, %v960_v60  ;;  %v2002_v52 = vpack.c.bf16 %v1475_v51, %v1474_v50  ;;  %v1477_v60 = vld [vmem:[%s2565_s1 + $0x98] sm:$0xff] }
 0x5ba   :  { %1973 = vmatpush3.bf16.msra.mxu0 %v1970_v12  ;;  %v1377_v12 = vld [vmem:[%s2565_s1 + $0x38] sm:$0xff] }
 0x5bb   :  { %1975 = vmatprep.subr.bf16.mxu0 %v1974_v59  ;;  %v1982_v38 = vpack.c.bf16 %v1377_v12, %v1376_v36 }
 0x5bd   :  { %1983 = vmatprep.subr.bf16.mxu1 %v1982_v38 }
 0x5be   :  { %1977 = vmatpush3.bf16.msra.mxu0 %v1974_v59  ;;  %1985 = vmatpush3.bf16.msra.mxu1 %v1982_v38  ;;  %v1476_v59 = vld [vmem:[%s2565_s1 + $0x90] sm:$0xff] }
 0x5bf   :  { %1987 = vmatprep.subr.bf16.mxu0 %v1986_v41 }
 0x5f3   :  { %v1194_v62 = vpop.permute.xlu1 %1193 }
 0x5f4   :  { %v1192_v61 = vpop.permute.xlu0 %1191 }
 0x5f5   :  { %1857 = vmatprep.mubr.msk.f32.mxu0 %vm26_vm0, %v1192_v61  ;;  %v2006_v61 = vpack.c.bf16 %v1477_v60, %v1476_v59 }
 0x5f6   :  { %1858 = vmatmul.mubr.msk.f32.vlgmr.msra.gmra.mrb[6].mxu0 %vm26_vm0, %v1194_v62  ;;  %v1478_v62 = vld [vmem:[%s2565_s1 + $0xa0] sm:$0xff] }
 0x5f7   :  { %1989 = vmatpush3.bf16.msra.mxu0 %v1986_v41 }
 0x5f8   :  { %v1208_v1 = vpop.permute.xlu0 %1207  ;;  %1991 = vmatprep.subr.bf16.mxu0 %v1990_v43 }
 0x5fb   :  { %1993 = vmatpush3.bf16.msra.mxu0 %v1990_v43 }
 0x5fc   :  { %1995 = vmatprep.subr.bf16.mxu0 %v1994_v46 }
 0x5ff   :  { %1997 = vmatpush3.bf16.msra.mxu0 %v1994_v46 }
 0x600   :  { %1999 = vmatprep.subr.bf16.mxu0 %v1998_v49 }
 0x603   :  { %2001 = vmatpush3.bf16.msra.mxu0 %v1998_v49 }
 0x604   :  { %2003 = vmatprep.subr.bf16.mxu0 %v2002_v52 }
 0x607   :  { %2005 = vmatpush3.bf16.msra.mxu0 %v2002_v52 }
 0x608   :  { %2007 = vmatprep.subr.bf16.mxu0 %v2006_v61 }
 0x60b   :  { %2009 = vmatpush3.bf16.msra.mxu0 %v2006_v61 }
 0x68c   :  { %v1837_v63 = vpop.f32.mrb[4].mxu0 }
 0x68d   :  { %v1042_v0 = vpop.f32.mrb[5].mxu0  ;;  %v1048_v24 = vadd.f32 %v1837_v63, %v2402_v19  ;;  %v1479_v63 = vld [vmem:[%s2565_s1 + $0xa8] sm:$0xff] }
 0x68e   :  { %v1043_v21 = vadd.f32 %v2402_v19, %v1042_v0  ;;  %v2010_v0 = vpack.c.bf16 %v1479_v63, %v1478_v62 }
 0x690   :  { %2011 = vmatprep.subr.bf16.mxu0 %v2010_v0 }
 0x691   :  { %2013 = vmatpush3.bf16.msra.mxu0 %v2010_v0 }
 0x6c9   :  { %v1859_v2 = vpop.f32.mrb[6].mxu0 }
 0x6ca   :  { %v1286_v3 = vadd.f32 %v1859_v2, %v1208_v1  ;;  %v1280_v6 = vpop.f32.mrb[7].mxu0 }
 0x6cb   :  { %v1281_v8 = vadd.f32 %v1280_v6, %v1208_v1 }
 0x6cc   :  { %v1290_v4 = vsub.f32 0.0, %v1286_v3 }
 0x6cd   :  { %v1289_v9 = vsub.f32 0.0, %v1281_v8 }
 0x6ce   :  { %v1293_v10 = vmul.f32 1.442695, %v1290_v4 }
 0x6cf   :  { %v1291_v14 = vmul.f32 1.442695, %v1289_v9 }
 0x6d0   :  { %2133 = vpow2.f32 %v1293_v10 }
 0x6d1   :  { %2135 = vpow2.f32 %v1291_v14 }
 0x6da   :  { %v2134_v15 = vpop.eup %2133 }
 0x6db   :  { %v2136_v16 = vpop.eup %2135  ;;  %v1296_v17 = vadd.f32 1.0, %v2134_v15 }
 0x6dc   :  { %v1295_v13 = vadd.f32 1.0, %v2136_v16 }
 0x6dd   :  { %2137 = vrcp.f32 %v1296_v17 }
 0x6de   :  { %2139 = vrcp.f32 %v1295_v13 }
 0x6e7   :  { %v2138_v18 = vpop.eup %2137 }
 0x6e8   :  { %v2140_v20 = vpop.eup %2139  ;;  %v1302_v22 = vadd.f32 1.0, %v2138_v18 }
 0x6e9   :  { %v1301_v23 = vadd.f32 1.0, %v2140_v20 }
 0x6ea   :  { %1310 = vperm.xlu0 %2082, %v1302_v22  }
 0x6eb   :  { %1305 = vperm.xlu1 %2081, %v1301_v23  }
 0x769   :  { %v1311_v25 = vpop.permute.xlu0 %1310 }
 0x76a   :  { %v1314_v26 = vmul.f32 %v1311_v25, %v1048_v24  ;;  %v1306_v35 = vpop.permute.xlu1 %1305  ;;  %v1672_v24 = vld [vmem:[%s2566_s2 + $0x4] ss:$0 sm:$0xff] }
 0x76b   :  { %v1313_v27 = vmul.f32 %v1306_v35, %v1043_v21  ;;  %v1673_v35 = vld [vmem:[%s2566_s2 + $0x5] ss:$0 sm:$0xff] }
 0x76c   :  { %v1316_v58 = vadd.f32 %v1314_v26, %v2236_v7 }
 0x76d   :  { %v1315_v28 = vadd.f32 %v1313_v27, %v2229_v5 }
 0x76e   :  { %v1322_v55 = vsel %vm26_vm0, %v1316_v58, 0.0 }
 0x76f   :  { %1323 = vadd.xlane.f32.xlu0 %v1322_v55  ;;  %v1319_v29 = vsel %vm26_vm0, %v1315_v28, 0.0 }
 0x770   :  { %1320 = vadd.xlane.f32.xlu1 %v1319_v29  ;;  %v1480_v29 = vld [vmem:[%s2565_s1 + $0xb0] sm:$0xff] }
 0x7fc   :  { %v1324_v56 = vpop.xlane.xlu0 %1323 }
 0x7fd   :  { %v1327_v57 = vmul.f32 0.03125, %v1324_v56  ;;  %v1321_v30 = vpop.xlane.xlu1 %1320  ;;  %v1481_v56 = vld [vmem:[%s2565_s1 + $0xb8] sm:$0xff] }
 0x7fe   :  { %v1326_v31 = vmul.f32 0.03125, %v1321_v30  ;;  %v1674_v30 = vld [vmem:[%s2566_s2 + $0x1] ss:$0 sm:$0xff] }
 0x7ff   :  { %v2453_v32 = vsub.f32 %v1316_v58, %v1327_v57  ;;  %v2014_v57 = vpack.c.bf16 %v1481_v56, %v1480_v29 }
 0x800   :  { %v2455_v19 = vsub.f32 %v1315_v28, %v1326_v31 }
 0x801   :  { %v1331_v53 = vmul.f32 %v2453_v32, %v2453_v32  ;;  %2015 = vmatprep.subr.bf16.mxu0 %v2014_v57 }
 0x802   :  { %v1330_v5 = vmul.f32 %v2455_v19, %v2455_v19  ;;  %2017 = vmatpush3.bf16.msra.mxu0 %v2014_v57 }
 0x803   :  { %v1335_v7 = vsel %vm26_vm0, %v1331_v53, 0.0 }
 0x804   :  { %1336 = vadd.xlane.f32.xlu1 %v1335_v7  ;;  %v1332_v54 = vsel %vm26_vm0, %v1330_v5, 0.0 }
 0x805   :  { %1333 = vadd.xlane.f32.xlu0 %v1332_v54  ;;  %v1677_v54 = vld [vmem:[%s2566_s2 + $0x3] ss:$0 sm:$0xff] }
 0x891   :  { %v1337_v1 = vpop.xlane.xlu1 %1336 }
 0x892   :  { %v1339_v2 = vmul.f32 0.032258064, %v1337_v1  ;;  %v1334_v3 = vpop.xlane.xlu0 %1333 }
 0x893   :  { %v1338_v6 = vmul.f32 0.032258064, %v1334_v3 }
 0x894   :  { %2141 = vrsqrt.f32 %v1339_v2  ;;  %vm1349_vm6 = vcmp.eq.f32.partialorder %v1339_v2, inf  ;;  %v1352_v10 = vand.u32 2147483648, %v1339_v2  ;;  %vm1351_vm7 = vcmp.eq.f32.partialorder %v1339_v2, 0.0 }
 0x895   :  { %2143 = vrsqrt.f32 %v1338_v6  ;;  %vm1342_vm8 = vcmp.eq.f32.partialorder %v1338_v6, inf  ;;  %v1345_v16 = vand.u32 2147483648, %v1338_v6  ;;  %vm1344_vm9 = vcmp.eq.f32.partialorder %v1338_v6, 0.0 }
 0x89e   :  { %v2142_v8 = vpop.eup %2141 }
 0x89f   :  { %v2144_v4 = vpop.eup %2143  ;;  %v1348_v9 = vmul.f32 %v2142_v8, %v1339_v2 }
 0x8a0   :  { %v1341_v14 = vmul.f32 %v2144_v4, %v1338_v6 }
 0x8a1   :  { %v1350_v15 = vsel %vm1349_vm6, %v1339_v2, %v1348_v9 }
 0x8a2   :  { %v1353_v17 = vsel %vm1351_vm7, %v1352_v10, %v1350_v15  ;;  %v1343_v13 = vsel %vm1342_vm8, %v1338_v6, %v1341_v14  ;;  %v1678_v14 = vld [vmem:[%s2566_s2 + $0x6] ss:$0 sm:$0xff] }
 0x8a3   :  { %v1355_v18 = vadd.f32 1e-06, %v1353_v17  ;;  %v1346_v20 = vsel %vm1344_vm9, %v1345_v16, %v1343_v13  ;;  %v1679_v17 = vld [vmem:[%s2566_s2 + $0x7] ss:$0 sm:$0xff] }
 0x8a4   :  { %v1354_v22 = vadd.f32 1e-06, %v1346_v20 }
 0x8a5   :  { %2145 = vrcp.f32 %v1355_v18 }
 0x8a6   :  { %2147 = vrcp.f32 %v1354_v22 }
 0x8af   :  { %v2146_v23 = vpop.eup %2145 }
 0x8b0   :  { %v2148_v21 = vpop.eup %2147  ;;  %v1361_v25 = vmul.f32 %v2146_v23, %v2453_v32 }
 0x8b1   :  { %v1360_v26 = vmul.f32 %v2148_v21, %v2455_v19 }
 0x8b2   :  { %v1367_v27 = vmul.f32 %v1672_v24, %v1361_v25 }
 0x8b3   :  { %v1366_v58 = vmul.f32 %v1672_v24, %v1360_v26 }
 0x8b4   :  { %v1373_v55 = vadd.f32 %v1673_v35, %v1367_v27 }
 0x8b5   :  { %v1372_v28 = vadd.f32 %v1673_v35, %v1366_v58 }
 0x8b7   :  { %1868 = vmatprep.mubr.msk.f32.mxu1 %vm26_vm0, %v1372_v28 }
 0x8b8   :  { %1869 = vmatmul.mubr.msk.f32.vlgmr.msra.gmra.mrb[16].mxu1 %vm26_vm0, %v1373_v55 }
 0x98b   :  { %v1870_v31 = vpop.f32.mrb[16].mxu1 }
 0x98c   :  { %v1461_v32 = vadd.f32 %v1870_v31, %v1674_v30  ;;  %v1455_v19 = vpop.f32.mrb[17].mxu1 }
 0x98d   :  { %v1456_v53 = vadd.f32 %v1674_v30, %v1455_v19 }
 0x98e   :  { %v1465_v7 = vmax.f32 %v1461_v32, 0.0 }
 0x98f   :  { %v1464_v5 = vmax.f32 %v1456_v53, 0.0 }
 0x991   :  { %1903 = vmatprep.mubr.f32.mxu0 %v1464_v5 }
 0x992   :  { %1904 = vmatmul.mubr.f32.vlgmr.msra.gmra.mrb[8].mxu0 %v1465_v7 }
 0xa65   :  { %v1905_v33 = vpop.f32.mrb[8].mxu0 }
 0xa66   :  { %v1559_v34 = vadd.f32 %v1905_v33, %v1677_v54  ;;  %v1553_v36 = vpop.f32.mrb[9].mxu0 }
 0xa67   :  { %v1554_v37 = vadd.f32 %v1677_v54, %v1553_v36 }
 0xa68   :  { %v1563_v12 = vadd.f32 %v1559_v34, %v1373_v55 }
 0xa69   :  { %v1562_v38 = vadd.f32 %v1554_v37, %v1372_v28 }
 0xa6a   :  { %v1569_v39 = vsel %vm26_vm0, %v1563_v12, 0.0 }
 0xa6b   :  { %1570 = vadd.xlane.f32.xlu1 %v1569_v39  ;;  %v1566_v11 = vsel %vm26_vm0, %v1562_v38, 0.0 }
 0xa6c   :  { %1567 = vadd.xlane.f32.xlu0 %v1566_v11 }
 0xaf8   :  { %v1571_v40 = vpop.xlane.xlu1 %1570 }
 0xaf9   :  { %v1573_v41 = vmul.f32 0.03125, %v1571_v40  ;;  %v1568_v42 = vpop.xlane.xlu0 %1567 }
 0xafa   :  { %v1572_v43 = vmul.f32 0.03125, %v1568_v42 }
 0xafb   :  { %v1575_v44 = vsub.f32 %v1563_v12, %v1573_v41 }
 0xafc   :  { %v1574_v45 = vsub.f32 %v1562_v38, %v1572_v43 }
 0xafd   :  { %v1577_v46 = vmul.f32 %v1575_v44, %v1575_v44 }
 0xafe   :  { %v1576_v47 = vmul.f32 %v1574_v45, %v1574_v45 }
 0xaff   :  { %v1581_v48 = vsel %vm26_vm0, %v1577_v46, 0.0 }
 0xb00   :  { %1582 = vadd.xlane.f32.xlu1 %v1581_v48  ;;  %v1578_v49 = vsel %vm26_vm0, %v1576_v47, 0.0 }
 0xb01   :  { %1579 = vadd.xlane.f32.xlu0 %v1578_v49 }
 0xb8d   :  { %v1583_v50 = vpop.xlane.xlu1 %1582 }
 0xb8e   :  { %v1585_v51 = vmul.f32 0.032258064, %v1583_v50  ;;  %v1580_v52 = vpop.xlane.xlu0 %1579 }
 0xb8f   :  { %v1584_v59 = vmul.f32 0.032258064, %v1580_v52 }
 0xb90   :  { %2149 = vrsqrt.f32 %v1585_v51  ;;  %vm1595_vm10 = vcmp.eq.f32.partialorder %v1585_v51, inf  ;;  %v1598_v63 = vand.u32 2147483648, %v1585_v51  ;;  %vm1597_vm11 = vcmp.eq.f32.partialorder %v1585_v51, 0.0 }
 0xb91   :  { %2151 = vrsqrt.f32 %v1584_v59  ;;  %vm1588_vm12 = vcmp.eq.f32.partialorder %v1584_v59, inf  ;;  %v1591_v2 = vand.u32 2147483648, %v1584_v59  ;;  %vm1590_vm13 = vcmp.eq.f32.partialorder %v1584_v59, 0.0 }
 0xb9a   :  { %v2150_v60 = vpop.eup %2149 }
 0xb9b   :  { %v2152_v61 = vpop.eup %2151  ;;  %v1594_v62 = vmul.f32 %v2150_v60, %v1585_v51 }
 0xb9c   :  { %v1587_v0 = vmul.f32 %v2152_v61, %v1584_v59 }
 0xb9d   :  { %v1596_v1 = vsel %vm1595_vm10, %v1585_v51, %v1594_v62 }
 0xb9e   :  { %v1599_v3 = vsel %vm1597_vm11, %v1598_v63, %v1596_v1  ;;  %v1589_v6 = vsel %vm1588_vm12, %v1584_v59, %v1587_v0 }
 0xb9f   :  { %v1601_v8 = vadd.f32 1e-06, %v1599_v3  ;;  %v1592_v4 = vsel %vm1590_vm13, %v1591_v2, %v1589_v6 }
 0xba0   :  { %v1600_v9 = vadd.f32 1e-06, %v1592_v4 }
 0xba1   :  { %2153 = vrcp.f32 %v1601_v8 }
 0xba2   :  { %2155 = vrcp.f32 %v1600_v9 }
 0xbab   :  { %v2154_v10 = vpop.eup %2153 }
 0xbac   :  { %v2156_v15 = vpop.eup %2155  ;;  %v1607_v16 = vmul.f32 %v2154_v10, %v1575_v44 }
 0xbad   :  { %v1606_v13 = vmul.f32 %v2156_v15, %v1574_v45 }
 0xbae   :  { %v1613_v18 = vmul.f32 %v1678_v14, %v1607_v16 }
 0xbaf   :  { %v1612_v20 = vmul.f32 %v1678_v14, %v1606_v13 }
 0xbb0   :  { %v1619_v22 = vadd.f32 %v1679_v17, %v1613_v18 }
 0xbb1   :  { %v1618_v23 = vadd.f32 %v1679_v17, %v1612_v20 }
 0xbb2   :  { %1621 = vst.msk [vmem:[#allocation2 + $0x8] sm:$0xff] %vm26_vm0, %v1619_v22 }
 0xbb3   :  { %1620 = vst.msk [vmem:[#allocation2] sm:$0xff] %vm26_vm0, %v1618_v23 }
 0xbb4   :  { %2168 = shalt.err (!%p2165_p4)
}
 0xbb5   :  { %s2169_s19 = scalar_lea.hbm %s2567_s3, 256 }
 0xbb6   :  { %p2170_p5 = scmp.ne.s32.totalorder %s2567_s3, %s2169_s19  ;;  %p2173_p6 = scmp.lt.u32.totalorder %s2169_s19, %s2567_s3 }
 0xbb8   :  { %p2175_p7 = pnand %p2173_p6, %p2170_p5 }
 0xbba   :  { %2178 = shalt.err (!%p2175_p7)
}
 0xbbb   :  { %s2193_s24 = smov 128  }
 0xbbc   :  { %1633 = dma.vmem_to_hbm [thread:$0]  %s1628_s16, 256, %s2567_s3, [#allocation3], %s2193_s24, %s2193_s24, %s2187_s13  }
 0xbbd   :  { %2179 = dma.done.wait [#allocation3], 256  }
 0xbbe   :  { %2180 = vsyncadd [#allocation3], 4294967040 }
 0xbbf   :  { %1637 = vsyncpa [#allocation3], 1 }

</bundles_post_ra>
